<compile_context>
chip_gen: v7x
topology: tpu7x:2x2x1
jax: 0.10.0
libtpu: 0.0.40
codegen_flags: <defaults>
</compile_context>

<pallas_src>
import numpy as np
import jax
import jax.numpy as jnp
from jax.experimental import pallas as pl
from jax.experimental.pallas import tpu as pltpu


def _round_up(x, m):
    return (x + m - 1) // m * m


def _make_tts_kernel(n_basis, bf16_multiply):
    def tts_kernel(x_ref, w1_ref, b1_ref, w2_ref, b2_ref, w3_ref, b3_ref,
                   phis_ref, bias_ref, out_ref):
        # Transposed encoder MLP (BN pre-folded): the sample axis D is on lanes.
        x = x_ref[...]                                                     # (M, TD)
        h1 = jnp.maximum(
            jnp.dot(w1_ref[...], x, preferred_element_type=jnp.float32)
            + b1_ref[...], 0.0)                                            # (H1, TD)
        h2 = jnp.maximum(
            jnp.dot(w2_ref[...], h1, preferred_element_type=jnp.float32)
            + b2_ref[...], 0.0)                                            # (H2, TD)
        h = (jnp.dot(w3_ref[...], h2, preferred_element_type=jnp.float32)
             + b3_ref[...])                                                # (B, TD)

        h_mul = h.astype(jnp.bfloat16) if bf16_multiply else h

        # out[n, d] = sum_b phis[b, n, d] * h[b, d]
        # Unrolled accumulate over the small outer B axis; every operand stays
        # lane-dense on D (no h[:, :, None] relayout, no cross-lane reduce).
        acc = None
        for b in range(n_basis):
            if bf16_multiply:
                prod = (phis_ref[b] * h_mul[b:b + 1, :]).astype(jnp.float32)
            else:
                prod = phis_ref[b].astype(jnp.float32) * h_mul[b:b + 1, :]
            acc = prod if acc is None else acc + prod
        out_ref[...] = acc + bias_ref[0]                                   # (N, TD)

    return tts_kernel


def fold_and_transpose_params(params, eps=1e-5):
    """Fold eval-mode BatchNorm1d into the Linears and transpose the (tiny)
    weights once for the D-on-lanes kernel layout.  Call once and reuse."""
    (w1, b1, g1, be1, m1, v1,
     w2, b2, g2, be2, m2, v2,
     w3, b3, bias) = params
    s1 = g1 / jnp.sqrt(v1 + eps)
    t1 = be1 - m1 * s1
    s2 = g2 / jnp.sqrt(v2 + eps)
    t2 = be2 - m2 * s2
    w1t = (w1 * s1[None, :]).T.astype(jnp.float32)            # (H1, M)
    b1c = (b1 * s1 + t1).reshape(-1, 1).astype(jnp.float32)   # (H1, 1)
    w2t = (w2 * s2[None, :]).T.astype(jnp.float32)            # (H2, H1)
    b2c = (b2 * s2 + t2).reshape(-1, 1).astype(jnp.float32)   # (H2, 1)
    w3t = w3.T.astype(jnp.float32)                             # (B, H2)
    b3c = b3.reshape(-1, 1).astype(jnp.float32)                # (B, 1)
    bias_s = jnp.asarray(bias, jnp.float32).reshape(1)
    return (w1t, b1c, w2t, b2c, w3t, b3c, bias_s)


def prepare_phis(Phis, dtype=jnp.float32):
    """(D, N, B) -> (B, N, D): contraction axis B outermost, the large sample
    axis D on lanes.  One HBM pass -- do it once outside the hot path and
    cache/reuse the result across forward calls."""
    return jnp.transpose(Phis, (2, 1, 0)).astype(dtype)


def _pick_tile_d(D, M, N, B, phis_itemsize,
                 vmem_budget_bytes=24 << 20, max_tile_d=2048, min_grid_steps=2):
    """Largest lane-aligned tile_d whose double-buffered streamed operands fit
    the VMEM budget, clamped so D keeps >= min_grid_steps grid steps (v7x
    megacore) and never exceeds the (lane-rounded) data extent."""
    n_pad = _round_up(N, 8)
    m_pad = _round_up(M, 8)

    def streamed_bytes(td):
        phis_buf = B * n_pad * td * phis_itemsize
        x_buf = m_pad * td * 4
        out_buf = n_pad * td * 4
        return 2 * (phis_buf + x_buf + out_buf)   # double-buffered pipeline

    td = 128
    while td * 2 <= max_tile_d and streamed_bytes(td * 2) <= vmem_budget_bytes:
        td *= 2
    if D > 128 * min_grid_steps:
        td = min(td, _round_up(-(-D // min_grid_steps), 128))
    td = min(td, _round_up(D, 128))               # no wider than the data
    return max(128, td)


def tts_forward(X, phis_bnd, folded_params, *, tile_d=None, bf16_multiply=None,
                vmem_budget_bytes=24 << 20):
    """X: (D, M) float; phis_bnd: (B, N, D) from prepare_phis();
    folded_params: from fold_and_transpose_params().  Returns (D, N)."""
    (w1t, b1c, w2t, b2c, w3t, b3c, bias_s) = folded_params
    B, N, D = phis_bnd.shape
    M = X.shape[1]
    H1 = w1t.shape[0]
    H2 = w2t.shape[0]
    assert X.shape[0] == D and w3t.shape[0] == B and w1t.shape[1] == M

    if bf16_multiply is None:
        # bf16 multiply + f32 accumulate is the fast path on v6e/v7x (bf16 VALU);
        # pass bf16_multiply=False on v5e to upcast the Phis tile instead.
        bf16_multiply = (phis_bnd.dtype == jnp.bfloat16)

    if tile_d is None:
        tile_d = _pick_tile_d(D, M, N, B, jnp.dtype(phis_bnd.dtype).itemsize,
                              vmem_budget_bytes=vmem_budget_bytes)
    tile_d = max(128, _round_up(tile_d, 128))

    x_t = X.T.astype(jnp.float32)                 # (M, D); tiny next to Phis

    grid = (pl.cdiv(D, tile_d),)                  # no zero-pad: boundary block
    kernel = pl.pallas_call(                      # tail columns are never stored
        _make_tts_kernel(B, bf16_multiply),
        out_shape=jax.ShapeDtypeStruct((N, D), jnp.float32),
        grid_spec=pltpu.PrefetchScalarGridSpec(
            num_scalar_prefetch=0,
            grid=grid,
            in_specs=[
                pl.BlockSpec((M, tile_d), lambda i: (0, i)),        # X^T tile (streamed)
                pl.BlockSpec((H1, M), lambda i: (0, 0)),            # w1^T (resident)
                pl.BlockSpec((H1, 1), lambda i: (0, 0)),            # b1 (BN folded)
                pl.BlockSpec((H2, H1), lambda i: (0, 0)),           # w2^T
                pl.BlockSpec((H2, 1), lambda i: (0, 0)),            # b2
                pl.BlockSpec((B, H2), lambda i: (0, 0)),            # w3^T
                pl.BlockSpec((B, 1), lambda i: (0, 0)),             # b3
                pl.BlockSpec((B, N, tile_d), lambda i: (0, 0, i)),  # Phis tile (streamed)
                pl.BlockSpec(memory_space=pltpu.MemorySpace.SMEM),  # scalar output bias
            ],
            out_specs=pl.BlockSpec((N, tile_d), lambda i: (0, i)),  # lane-dense store
        ),
        compiler_params=pltpu.CompilerParams(
            dimension_semantics=("parallel",),        # megacore-shard D on v7x
            vmem_limit_bytes=32 * 1024 * 1024,        # > budget; safe on v5e..v7x
        ),
    )
    out_nd = kernel(x_t, w1t, b1c, w2t, b2c, w3t, b3c, phis_bnd, bias_s)
    # Small (N, D) -> (D, N) transpose outside the kernel to match the module.
    return out_nd.T


def tts_reference(X, Phis, params):
    """Pure-JAX reference matching the PyTorch module (eval mode)."""
    (w1, b1, g1, be1, m1, v1,
     w2, b2, g2, be2, m2, v2,
     w3, b3, bias) = params
    eps = 1e-5
    h = X @ w1 + b1
    h = (h - m1) / jnp.sqrt(v1 + eps) * g1 + be1
    h = jnp.maximum(h, 0.0)
    h = h @ w2 + b2
    h = (h - m2) / jnp.sqrt(v2 + eps) * g2 + be2
    h = jnp.maximum(h, 0.0)
    h = h @ w3 + b3                                   # (D, B)
    return jnp.einsum('dnb,db->dn', Phis, h) + bias[0]


if __name__ == "__main__":
    # Small shapes consistent with the module:
    #   D samples, M static features, hidden sizes [H1, H2], B basis fns,
    #   N time steps. dynamic_bias = False, dataloader_type = 'tensor'.
    D, M, H1, H2, B, N = 20, 16, 32, 32, 8, 16

    key = jax.random.PRNGKey(0)
    ks = jax.random.split(key, 16)

    w1 = jax.random.normal(ks[0], (M, H1), jnp.float32) * 0.1
    b1 = jax.random.normal(ks[1], (H1,), jnp.float32) * 0.1
    g1 = 1.0 + 0.1 * jax.random.normal(ks[2], (H1,), jnp.float32)
    be1 = 0.1 * jax.random.normal(ks[3], (H1,), jnp.float32)
    m1 = 0.1 * jax.random.normal(ks[4], (H1,), jnp.float32)
    v1 = jnp.abs(jax.random.normal(ks[5], (H1,), jnp.float32)) + 0.5

    w2 = jax.random.normal(ks[6], (H1, H2), jnp.float32) * 0.1
    b2 = jax.random.normal(ks[7], (H2,), jnp.float32) * 0.1
    g2 = 1.0 + 0.1 * jax.random.normal(ks[8], (H2,), jnp.float32)
    be2 = 0.1 * jax.random.normal(ks[9], (H2,), jnp.float32)
    m2 = 0.1 * jax.random.normal(ks[10], (H2,), jnp.float32)
    v2 = jnp.abs(jax.random.normal(ks[11], (H2,), jnp.float32)) + 0.5

    w3 = jax.random.normal(ks[12], (H2, B), jnp.float32) * 0.1
    b3 = jax.random.normal(ks[13], (B,), jnp.float32) * 0.1
    # nn.Parameter(torch.zeros(1)) at init; nonzero to exercise the add path.
    bias = jnp.array([0.25], jnp.float32)

    params = (w1, b1, g1, be1, m1, v1,
              w2, b2, g2, be2, m2, v2,
              w3, b3, bias)

    X = jax.random.normal(ks[14], (D, M), jnp.float32)
    Phis = jax.random.uniform(ks[15], (D, N, B), jnp.float32)

    # One-time preprocessing (outside the hot path, cacheable across calls).
    folded = fold_and_transpose_params(params)

    # f32 Phis path (exact module semantics).
    phis_f32 = prepare_phis(Phis, jnp.float32)
    out = tts_forward(X, phis_f32, folded)
    out = jax.block_until_ready(out)
    ref = tts_reference(X, Phis, params)
    assert out.shape == (D, N)
    np.testing.assert_allclose(np.asarray(out), np.asarray(ref),
                               rtol=1e-5, atol=1e-5)

    # bf16 Phis path (halves the dominant HBM stream; bf16 multiply, f32
    # accumulate).  Compared against the reference with bf16-rounded Phis.
    phis_bf16 = prepare_phis(Phis, jnp.bfloat16)
    out_bf16 = tts_forward(X, phis_bf16, folded, bf16_multiply=True)
    out_bf16 = jax.block_until_ready(out_bf16)
    ref_bf16 = tts_reference(
        X, Phis.astype(jnp.bfloat16).astype(jnp.float32), params)
    np.testing.assert_allclose(np.asarray(out_bf16), np.asarray(ref_bf16),
                               rtol=2e-2, atol=2e-2)

    # TODO(synk): training-mode BatchNorm (batch statistics), Dropout RNG,
    # dynamic_bias=True, and the 'iterative' dataloader path (ragged list of
    # Phi matrices) are not reproduced in-kernel; eval-mode 'tensor' semantics only.
    print("KERNEL_OK")
</pallas_src>

<mosaic_0001>
module attributes {stable_mosaic.version = 11 : i64} {
  func.func @tts_kernel(%arg0: i32, %arg1: memref<16x128xf32, #tpu.memory_space<vmem>>, %arg2: memref<32x16xf32, #tpu.memory_space<vmem>>, %arg3: memref<32x1xf32, #tpu.memory_space<vmem>>, %arg4: memref<32x32xf32, #tpu.memory_space<vmem>>, %arg5: memref<32x1xf32, #tpu.memory_space<vmem>>, %arg6: memref<8x32xf32, #tpu.memory_space<vmem>>, %arg7: memref<8x1xf32, #tpu.memory_space<vmem>>, %arg8: memref<8x16x128xf32, #tpu.memory_space<vmem>>, %arg9: memref<1xf32, #tpu.memory_space<smem>>, %arg10: memref<16x128xf32, #tpu.memory_space<vmem>>) attributes {dimension_semantics = [#tpu.dimension_semantics<parallel>], iteration_bounds = array<i64: 1>, scalar_prefetch = 0 : i64, scratch_operands = 0 : i64, tpu.core_type = #tpu.core_type<tc>, window_params = [{transform_indices = @transform_0, window_bounds = array<i64: 16, 128>}, {pipeline_mode = #tpu.pipeline_mode<synchronous>, transform_indices = @transform_1, window_bounds = array<i64: 32, 16>}, {pipeline_mode = #tpu.pipeline_mode<synchronous>, transform_indices = @transform_2, window_bounds = array<i64: 32, 1>}, {pipeline_mode = #tpu.pipeline_mode<synchronous>, transform_indices = @transform_3, window_bounds = array<i64: 32, 32>}, {pipeline_mode = #tpu.pipeline_mode<synchronous>, transform_indices = @transform_4, window_bounds = array<i64: 32, 1>}, {pipeline_mode = #tpu.pipeline_mode<synchronous>, transform_indices = @transform_5, window_bounds = array<i64: 8, 32>}, {pipeline_mode = #tpu.pipeline_mode<synchronous>, transform_indices = @transform_6, window_bounds = array<i64: 8, 1>}, {transform_indices = @transform_7, window_bounds = array<i64: 8, 16, 128>}, {transform_indices = @transform_8, window_bounds = array<i64: 1>}, {transform_indices = @transform_9, window_bounds = array<i64: 16, 128>}]} {
    %c0 = arith.constant 0 : index
    %c0_0 = arith.constant 0 : index
    %0 = vector.load %arg1[%c0, %c0_0] : memref<16x128xf32, #tpu.memory_space<vmem>>, vector<16x128xf32>
    %c0_1 = arith.constant 0 : index
    %c0_2 = arith.constant 0 : index
    %1 = vector.load %arg2[%c0_1, %c0_2] : memref<32x16xf32, #tpu.memory_space<vmem>>, vector<32x16xf32>
    %cst = arith.constant dense<0.000000e+00> : vector<32x128xf32>
    %2 = tpu.matmul %1, %0, %cst {dimension_numbers = #tpu.dot_dimension_numbers<[1], [0], [0], [1], [0, 0, 1, 1], [], []>} : vector<32x16xf32>, vector<16x128xf32>, vector<32x128xf32> -> vector<32x128xf32>
    %c0_3 = arith.constant 0 : index
    %c0_4 = arith.constant 0 : index
    %3 = vector.load %arg3[%c0_3, %c0_4] : memref<32x1xf32, #tpu.memory_space<vmem>>, vector<32x1xf32>
    %4 = vector.broadcast %3 : vector<32x1xf32> to vector<32x128xf32>
    %5 = arith.addf %2, %4 : vector<32x128xf32>
    %cst_5 = arith.constant 0.000000e+00 : f32
    %6 = vector.broadcast %cst_5 : f32 to vector<32x128xf32>
    %7 = arith.maximumf %5, %6 : vector<32x128xf32>
    %c0_6 = arith.constant 0 : index
    %c0_7 = arith.constant 0 : index
    %8 = vector.load %arg4[%c0_6, %c0_7] : memref<32x32xf32, #tpu.memory_space<vmem>>, vector<32x32xf32>
    %cst_8 = arith.constant dense<0.000000e+00> : vector<32x128xf32>
    %9 = tpu.matmul %8, %7, %cst_8 {dimension_numbers = #tpu.dot_dimension_numbers<[1], [0], [0], [1], [0, 0, 1, 1], [], []>} : vector<32x32xf32>, vector<32x128xf32>, vector<32x128xf32> -> vector<32x128xf32>
    %c0_9 = arith.constant 0 : index
    %c0_10 = arith.constant 0 : index
    %10 = vector.load %arg5[%c0_9, %c0_10] : memref<32x1xf32, #tpu.memory_space<vmem>>, vector<32x1xf32>
    %11 = vector.broadcast %10 : vector<32x1xf32> to vector<32x128xf32>
    %12 = arith.addf %9, %11 : vector<32x128xf32>
    %cst_11 = arith.constant 0.000000e+00 : f32
    %13 = vector.broadcast %cst_11 : f32 to vector<32x128xf32>
    %14 = arith.maximumf %12, %13 : vector<32x128xf32>
    %c0_12 = arith.constant 0 : index
    %c0_13 = arith.constant 0 : index
    %15 = vector.load %arg6[%c0_12, %c0_13] : memref<8x32xf32, #tpu.memory_space<vmem>>, vector<8x32xf32>
    %cst_14 = arith.constant dense<0.000000e+00> : vector<8x128xf32>
    %16 = tpu.matmul %15, %14, %cst_14 {dimension_numbers = #tpu.dot_dimension_numbers<[1], [0], [0], [1], [0, 0, 1, 1], [], []>} : vector<8x32xf32>, vector<32x128xf32>, vector<8x128xf32> -> vector<8x128xf32>
    %c0_15 = arith.constant 0 : index
    %c0_16 = arith.constant 0 : index
    %17 = vector.load %arg7[%c0_15, %c0_16] : memref<8x1xf32, #tpu.memory_space<vmem>>, vector<8x1xf32>
    %18 = vector.broadcast %17 : vector<8x1xf32> to vector<8x128xf32>
    %19 = arith.addf %16, %18 : vector<8x128xf32>
    %c0_17 = arith.constant 0 : index
    %c0_18 = arith.constant 0 : index
    %c0_19 = arith.constant 0 : index
    %20 = vector.load %arg8[%c0_17, %c0_18, %c0_19] : memref<8x16x128xf32, #tpu.memory_space<vmem>>, vector<1x16x128xf32>
    %21 = vector.shape_cast %20 : vector<1x16x128xf32> to vector<16x128xf32>
    %22 = vector.extract_strided_slice %19 {offsets = [0, 0], sizes = [1, 128], strides = [1, 1]} : vector<8x128xf32> to vector<1x128xf32>
    %23 = vector.broadcast %22 : vector<1x128xf32> to vector<16x128xf32>
    %24 = arith.mulf %21, %23 : vector<16x128xf32>
    %c1 = arith.constant 1 : index
    %c0_20 = arith.constant 0 : index
    %c0_21 = arith.constant 0 : index
    %25 = vector.load %arg8[%c1, %c0_20, %c0_21] : memref<8x16x128xf32, #tpu.memory_space<vmem>>, vector<1x16x128xf32>
    %26 = vector.shape_cast %25 : vector<1x16x128xf32> to vector<16x128xf32>
    %27 = vector.extract_strided_slice %19 {offsets = [1, 0], sizes = [1, 128], strides = [1, 1]} : vector<8x128xf32> to vector<1x128xf32>
    %28 = vector.broadcast %27 : vector<1x128xf32> to vector<16x128xf32>
    %29 = arith.mulf %26, %28 : vector<16x128xf32>
    %30 = arith.addf %24, %29 : vector<16x128xf32>
    %c2 = arith.constant 2 : index
    %c0_22 = arith.constant 0 : index
    %c0_23 = arith.constant 0 : index
    %31 = vector.load %arg8[%c2, %c0_22, %c0_23] : memref<8x16x128xf32, #tpu.memory_space<vmem>>, vector<1x16x128xf32>
    %32 = vector.shape_cast %31 : vector<1x16x128xf32> to vector<16x128xf32>
    %33 = vector.extract_strided_slice %19 {offsets = [2, 0], sizes = [1, 128], strides = [1, 1]} : vector<8x128xf32> to vector<1x128xf32>
    %34 = vector.broadcast %33 : vector<1x128xf32> to vector<16x128xf32>
    %35 = arith.mulf %32, %34 : vector<16x128xf32>
    %36 = arith.addf %30, %35 : vector<16x128xf32>
    %c3 = arith.constant 3 : index
    %c0_24 = arith.constant 0 : index
    %c0_25 = arith.constant 0 : index
    %37 = vector.load %arg8[%c3, %c0_24, %c0_25] : memref<8x16x128xf32, #tpu.memory_space<vmem>>, vector<1x16x128xf32>
    %38 = vector.shape_cast %37 : vector<1x16x128xf32> to vector<16x128xf32>
    %39 = vector.extract_strided_slice %19 {offsets = [3, 0], sizes = [1, 128], strides = [1, 1]} : vector<8x128xf32> to vector<1x128xf32>
    %40 = vector.broadcast %39 : vector<1x128xf32> to vector<16x128xf32>
    %41 = arith.mulf %38, %40 : vector<16x128xf32>
    %42 = arith.addf %36, %41 : vector<16x128xf32>
    %c4 = arith.constant 4 : index
    %c0_26 = arith.constant 0 : index
    %c0_27 = arith.constant 0 : index
    %43 = vector.load %arg8[%c4, %c0_26, %c0_27] : memref<8x16x128xf32, #tpu.memory_space<vmem>>, vector<1x16x128xf32>
    %44 = vector.shape_cast %43 : vector<1x16x128xf32> to vector<16x128xf32>
    %45 = vector.extract_strided_slice %19 {offsets = [4, 0], sizes = [1, 128], strides = [1, 1]} : vector<8x128xf32> to vector<1x128xf32>
    %46 = vector.broadcast %45 : vector<1x128xf32> to vector<16x128xf32>
    %47 = arith.mulf %44, %46 : vector<16x128xf32>
    %48 = arith.addf %42, %47 : vector<16x128xf32>
    %c5 = arith.constant 5 : index
    %c0_28 = arith.constant 0 : index
    %c0_29 = arith.constant 0 : index
    %49 = vector.load %arg8[%c5, %c0_28, %c0_29] : memref<8x16x128xf32, #tpu.memory_space<vmem>>, vector<1x16x128xf32>
    %50 = vector.shape_cast %49 : vector<1x16x128xf32> to vector<16x128xf32>
    %51 = vector.extract_strided_slice %19 {offsets = [5, 0], sizes = [1, 128], strides = [1, 1]} : vector<8x128xf32> to vector<1x128xf32>
    %52 = vector.broadcast %51 : vector<1x128xf32> to vector<16x128xf32>
    %53 = arith.mulf %50, %52 : vector<16x128xf32>
    %54 = arith.addf %48, %53 : vector<16x128xf32>
    %c6 = arith.constant 6 : index
    %c0_30 = arith.constant 0 : index
    %c0_31 = arith.constant 0 : index
    %55 = vector.load %arg8[%c6, %c0_30, %c0_31] : memref<8x16x128xf32, #tpu.memory_space<vmem>>, vector<1x16x128xf32>
    %56 = vector.shape_cast %55 : vector<1x16x128xf32> to vector<16x128xf32>
    %57 = vector.extract_strided_slice %19 {offsets = [6, 0], sizes = [1, 128], strides = [1, 1]} : vector<8x128xf32> to vector<1x128xf32>
    %58 = vector.broadcast %57 : vector<1x128xf32> to vector<16x128xf32>
    %59 = arith.mulf %56, %58 : vector<16x128xf32>
    %60 = arith.addf %54, %59 : vector<16x128xf32>
    %c7 = arith.constant 7 : index
    %c0_32 = arith.constant 0 : index
    %c0_33 = arith.constant 0 : index
    %61 = vector.load %arg8[%c7, %c0_32, %c0_33] : memref<8x16x128xf32, #tpu.memory_space<vmem>>, vector<1x16x128xf32>
    %62 = vector.shape_cast %61 : vector<1x16x128xf32> to vector<16x128xf32>
    %63 = vector.extract_strided_slice %19 {offsets = [7, 0], sizes = [1, 128], strides = [1, 1]} : vector<8x128xf32> to vector<1x128xf32>
    %64 = vector.broadcast %63 : vector<1x128xf32> to vector<16x128xf32>
    %65 = arith.mulf %62, %64 : vector<16x128xf32>
    %66 = arith.addf %60, %65 : vector<16x128xf32>
    %c0_34 = arith.constant 0 : index
    %67 = memref.load %arg9[%c0_34] : memref<1xf32, #tpu.memory_space<smem>>
    %68 = vector.broadcast %67 : f32 to vector<16x128xf32>
    %69 = arith.addf %66, %68 : vector<16x128xf32>
    %c0_35 = arith.constant 0 : index
    %c0_36 = arith.constant 0 : index
    %70 = vector.load %arg10[%c0_35, %c0_36] : memref<16x128xf32, #tpu.memory_space<vmem>>, vector<16x128xf32>
    tpu.vector_store %arg10[%c0_35, %c0_36], %69 {strides = array<i32>} : memref<16x128xf32, #tpu.memory_space<vmem>>, vector<16x128xf32>,
    return
  }
  func.func @transform_0(%arg0: i32) -> (i32, i32) {
    %c0_i32 = arith.constant 0 : i32
    %c0_i32_0 = arith.constant 0 : i32
    return %c0_i32, %arg0 : i32, i32
  }
  func.func @transform_1(%arg0: i32) -> (i32, i32) {
    %c0_i32 = arith.constant 0 : i32
    %c0_i32_0 = arith.constant 0 : i32
    %c0_i32_1 = arith.constant 0 : i32
    return %c0_i32, %c0_i32_0 : i32, i32
  }
  func.func @transform_2(%arg0: i32) -> (i32, i32) {
    %c0_i32 = arith.constant 0 : i32
    %c0_i32_0 = arith.constant 0 : i32
    %c0_i32_1 = arith.constant 0 : i32
    return %c0_i32, %c0_i32_0 : i32, i32
  }
  func.func @transform_3(%arg0: i32) -> (i32, i32) {
    %c0_i32 = arith.constant 0 : i32
    %c0_i32_0 = arith.constant 0 : i32
    %c0_i32_1 = arith.constant 0 : i32
    return %c0_i32, %c0_i32_0 : i32, i32
  }
  func.func @transform_4(%arg0: i32) -> (i32, i32) {
    %c0_i32 = arith.constant 0 : i32
    %c0_i32_0 = arith.constant 0 : i32
    %c0_i32_1 = arith.constant 0 : i32
    return %c0_i32, %c0_i32_0 : i32, i32
  }
  func.func @transform_5(%arg0: i32) -> (i32, i32) {
    %c0_i32 = arith.constant 0 : i32
    %c0_i32_0 = arith.constant 0 : i32
    %c0_i32_1 = arith.constant 0 : i32
    return %c0_i32, %c0_i32_0 : i32, i32
  }
  func.func @transform_6(%arg0: i32) -> (i32, i32) {
    %c0_i32 = arith.constant 0 : i32
    %c0_i32_0 = arith.constant 0 : i32
    %c0_i32_1 = arith.constant 0 : i32
    return %c0_i32, %c0_i32_0 : i32, i32
  }
  func.func @transform_7(%arg0: i32) -> (i32, i32, i32) {
    %c0_i32 = arith.constant 0 : i32
    %c0_i32_0 = arith.constant 0 : i32
    %c0_i32_1 = arith.constant 0 : i32
    return %c0_i32, %c0_i32_0, %arg0 : i32, i32, i32
  }
  func.func @transform_8(%arg0: i32) -> i32 {
    %c0_i32 = arith.constant 0 : i32
    %c0_i32_0 = arith.constant 0 : i32
    return %c0_i32 : i32
  }
  func.func @transform_9(%arg0: i32) -> (i32, i32) {
    %c0_i32 = arith.constant 0 : i32
    %c0_i32_0 = arith.constant 0 : i32
    return %c0_i32, %arg0 : i32, i32
  }
}

</mosaic_0001>

<bundles_post_ra>
// kernel: tpu_custom_call.1
= control target key start
LH: loop header
LB: loop body
LE: loop exit
PB: predicated region body
PF: predicated region fallthrough
CT: control target
= control target key end

     0   :  { %15 = vsyncpa [#allocation4], 0  ;;  %s847_s0 = inlined_call_operand.vmem [shape: f32[16,20], index: 0, kind: input, shape index: {}]   ;;  %s848_s1 = inlined_call_operand.vmem [shape: f32[32,16], index: 1, kind: input, shape index: {}]   ;;  %s849_s2 = inlined_call_operand.vmem [shape: f32[32,1], index: 2, kind: input, shape index: {}]   ;;  %s850_s3 = inlined_call_operand.hbm [shape: f32[32,32], index: 3, kind: input, shape index: {}]   ;;  %s851_s4 = inlined_call_operand.vmem [shape: f32[32,1], index: 4, kind: input, shape index: {}]   ;;  %s852_s5 = inlined_call_operand.vmem [shape: f32[8,32], index: 5, kind: input, shape index: {}]   ;;  %s853_s6 = inlined_call_operand.vmem [shape: f32[8,1], index: 6, kind: input, shape index: {}]   ;;  %s854_s7 = inlined_call_operand.vmem [shape: f32[8,16,20], index: 7, kind: input, shape index: {}]   ;;  %s855_s8 = inlined_call_operand.<no memory space> [shape: f32[1], index: 8, kind: input, shape index: {}]   ;;  %s856_s9 = inlined_call_operand.hbm [shape: f32[16,20], index: 9, kind: output, shape index: {}]  }
   0x1   :  { %16 = vsyncpa [#allocation5], 0  ;;  %s651_s30 = smov [#allocation3]   ;;  %s603_s13 = scalar_lea.hbm %s850_s3, 512 }
   0x2   :  { %s28_s10 = sshll.u32 %s651_s30, 4  ;;  %p604_p0 = scmp.ne.s32.totalorder %s850_s3, %s603_s13  ;;  %s29_s10 = int_to_ptr.vmem [resolvable:$true] %s28_s10 }
   0x3   :  { %p607_p1 = scmp.lt.u32.totalorder %s603_s13, %s850_s3 }
   0x5   :  { %p609_p2 = pnand %p607_p1, %p604_p0 }
   0x7   :  { %612 = shalt.err (!%p609_p2)
}
   0x8   :  { %s613_s18 = scalar_lea.vmem %s29_s10, 512  ;;  %p618_p4 = scmp.lt.s32.totalorder %s29_s10, %s29_s10 }
   0x9   :  { %p614_p3 = scmp.ne.s32.totalorder %s29_s10, %s613_s18  ;;  %p619_p5 = scmp.lt.s32.totalorder %s613_s18, %s613_s18 }
   0xb   :  { %p620_p6 = por %p619_p5, %p618_p4 }
   0xd   :  { %p621_p7 = pnand %p620_p6, %p614_p3 }
   0xf   :  { %624 = shalt.err (!%p621_p7)
}
  0x10   :  { %s652_s19 = smov 128   ;;  %s653_s20 = smov 8  }
  0x11   :  { %34 = dma.hbm_to_vmem [thread:$0]  %s850_s3, 512, %s29_s10, [#allocation4], %s652_s19, %s652_s19, %s653_s20  }
  0x12   :  { %647 = dma.done.wait [#allocation4], 512  }
  0x13   :  { %648 = vsyncadd [#allocation4], 4294966784  ;;  %v654_v0 = vmov 0   ;;  %vm78_vm0 = vcmask 130048   ;;  %v48_v1 = vld [vmem:[%s847_s0] sm:$0xff]  ;;  %v49_v2 = vld [vmem:[%s847_s0 + $0x8] sm:$0xff]  ;;  %v392_v60 = vlaneseq }
  0x14   :  { %601 = vset.pattern.permute.xlu0 %v654_v0  ;;  %602 = vset.pattern.permute.xlu1 %v654_v0  ;;  %v50_v3 = vld [vmem:[%s848_s1] sm:$0xff]  ;;  %v575_v4 = vpack.c.bf16 %v49_v2, %v48_v1  ;;  %v56_v6 = vld [vmem:[%s849_s2 + $0x10] sm:$0xff]  ;;  %v51_v7 = vld [vmem:[%s848_s1 + $0x8] sm:$0xff]  ;;  %vm208_vm1 = vcmask 261120   ;;  %v655_v39 = vmov 0.0|0.0   ;;  %vm656_vm2 = vmmov 0  }
  0x15   :  { %544 = vmatprep.mubr.msk.f32.mxu0 %vm78_vm0, %v50_v3  ;;  %v54_v5 = vld [vmem:[%s849_s2] sm:$0xff]  ;;  %v55_v8 = vld [vmem:[%s849_s2 + $0x8] sm:$0xff]  ;;  %70 = vperm.xlu1 %602, %v56_v6   ;;  %v52_v9 = vld [vmem:[%s848_s1 + $0x10] sm:$0xff]  ;;  %v657_v40 = vmov 0.0   ;;  %v393_v61 = vshrl.u32 %v392_v60, 7  ;;  %s658_s14 = smov [#allocation6]  }
  0x16   :  { %576 = vmatprep.subr.bf16.mxu0 %v575_v4  ;;  %60 = vperm.xlu0 %601, %v54_v5   ;;  %v57_v10 = vld [vmem:[%s849_s2 + $0x18] sm:$0xff]  ;;  %v184_v12 = vld [vmem:[%s851_s4] sm:$0xff]  ;;  %v185_v13 = vld [vmem:[%s851_s4 + $0x8] sm:$0xff]  ;;  %s486_s15 = sshll.u32 %s658_s14, 4  ;;  %s487_s15 = int_to_ptr.vmem [resolvable:$true] %s486_s15 }
  0x17   :  { %578 = vmatpush3.bf16.msra.mxu0 %v575_v4  ;;  %v53_v11 = vld [vmem:[%s848_s1 + $0x18] sm:$0xff]  ;;  %v186_v14 = vld [vmem:[%s851_s4 + $0x10] sm:$0xff]  ;;  %v311_v16 = vld [vmem:[%s853_s6] sm:$0xff]  ;;  %v394_v62 = vsub.s32 0, %v393_v61  ;;  %v403_v63 = vsub.s32 1, %v393_v61  ;;  %v414_v0 = vsub.s32 2, %v393_v61  ;;  %p630_p9 = scmp.lt.s32.totalorder %s487_s15, %s487_s15 }
  0x18   :  { %v187_v15 = vld [vmem:[%s851_s4 + $0x18] sm:$0xff]  ;;  %v180_v17 = vld [vmem:[#allocation3] sm:$0xff]  ;;  %v181_v36 = vld [vmem:[#allocation3 + $0x8] sm:$0xff]  ;;  %587 = vmatprep.subr.bf16.mxu0 %v655_v39  ;;  %v425_v3 = vsub.s32 3, %v393_v61 }
  0x19   :  { %75 = vperm.xlu1 %602, %v57_v10   ;;  %558 = vmatprep.mubr.msk.f32.mxu1 %vm208_vm1, %v180_v17  ;;  %v182_v37 = vld [vmem:[#allocation3 + $0x10] sm:$0xff]  ;;  %v183_v38 = vld [vmem:[#allocation3 + $0x18] sm:$0xff]  ;;  %v310_v59 = vld [vmem:[%s852_s5] sm:$0xff]  ;;  %v436_v10 = vsub.s32 4, %v393_v61  ;;  %v447_v17 = vsub.s32 5, %v393_v61 }
  0x1a   :  { %545 = vmatmul.mubr.msk.f32.vlgmr.msra.gmra.mrb[0].mxu0 %vm78_vm0, %v51_v7  ;;  %65 = vperm.xlu0 %601, %v55_v8   ;;  %v390_v6 = vld [vmem:[%s854_s7] sm:$0xff]  ;;  %v391_v7 = vld [vmem:[%s854_s7 + $0x8] sm:$0xff]  ;;  %v507_v8 = vld [vmem:[%s854_s7 + $0x10] sm:$0xff] }
  0x1b   :  { %547 = vmatprep.mubr.msk.f32.mxu0 %vm78_vm0, %v52_v9  ;;  %v508_v9 = vld [vmem:[%s854_s7 + $0x18] sm:$0xff] }
  0x1d   :  { %195 = vperm.xlu1 %602, %v185_v13  }
  0x1e   :  { %548 = vmatmul.mubr.msk.f32.gmra.mrb[2].mxu0 %vm78_vm0, %v53_v11  ;;  %190 = vperm.xlu0 %601, %v184_v12  }
  0x1f   :  { %572 = vmatprep.mubr.msk.f32.mxu0 %vm656_vm2, %v657_v40 }
  0x21   :  { %205 = vperm.xlu1 %602, %v187_v15   ;;  %v510_v15 = vld [vmem:[%s854_s7 + $0x28] sm:$0xff] }
  0x22   :  { %200 = vperm.xlu0 %601, %v186_v14   ;;  %v509_v14 = vld [vmem:[%s854_s7 + $0x20] sm:$0xff] }
  0x26   :  { %314 = vperm.xlu0 %601, %v311_v16  }
  0x94   :  { %v71_v19 = vpop.permute.xlu1 %70 }
  0x95   :  { %v61_v18 = vpop.permute.xlu0 %60 }
  0x98   :  { %v76_v26 = vpop.permute.xlu1 %75 }
  0x99   :  { %v66_v20 = vpop.permute.xlu0 %65 }
  0x9c   :  { %v196_v41 = vpop.permute.xlu1 %195 }
  0x9d   :  { %v191_v42 = vpop.permute.xlu0 %190 }
  0xa0   :  { %v206_v48 = vpop.permute.xlu1 %205 }
  0xa1   :  { %v201_v51 = vpop.permute.xlu0 %200 }
  0xa5   :  { %v315_v1 = vpop.permute.xlu0 %314 }
  0xed   :  { %v546_v21 = vpop.f32.mrb[0].mxu0 }
  0xee   :  { %v163_v22 = vadd.f32 %v546_v21, %v66_v20  ;;  %v157_v23 = vpop.f32.mrb[1].mxu0 }
  0xef   :  { %v158_v24 = vadd.f32 %v157_v23, %v61_v18  ;;  %v512_v23 = vld [vmem:[%s854_s7 + $0x38] sm:$0xff] }
  0xf0   :  { %v177_v25 = vmax.f32 %v163_v22, 0.0  ;;  %v511_v22 = vld [vmem:[%s854_s7 + $0x30] sm:$0xff] }
  0xf1   :  { %v176_v27 = vmax.f32 %v158_v24, 0.0  ;;  %v549_v28 = vpop.f32.mrb[2].mxu0 }
  0xf2   :  { %v173_v29 = vadd.f32 %v549_v28, %v76_v26  ;;  %v167_v30 = vpop.f32.mrb[3].mxu0 }
  0xf3   :  { %v168_v31 = vadd.f32 %v167_v30, %v71_v19  ;;  %v579_v32 = vpack.c.bf16 %v177_v25, %v176_v27  ;;  %v458_v25 = vsub.s32 6, %v393_v61  ;;  %v513_v30 = vld [vmem:[%s854_s7 + $0x40] sm:$0xff] }
  0xf4   :  { %v179_v33 = vmax.f32 %v173_v29, 0.0 }
  0xf5   :  { %v178_v34 = vmax.f32 %v168_v31, 0.0  ;;  %580 = vmatprep.subr.bf16.mxu1 %v579_v32  ;;  %v514_v31 = vld [vmem:[%s854_s7 + $0x48] sm:$0xff] }
  0xf6   :  { %582 = vmatpush3.bf16.msra.mxu1 %v579_v32 }
  0xf7   :  { %v583_v35 = vpack.c.bf16 %v179_v33, %v178_v34  ;;  %v469_v33 = vsub.s32 7, %v393_v61 }
  0xf9   :  { %584 = vmatprep.subr.bf16.mxu1 %v583_v35 }
  0xfa   :  { %586 = vmatpush3.bf16.msra.mxu1 %v583_v35 }
  0xfd   :  { %559 = vmatmul.mubr.msk.f32.vlgmr.msra.gmra.mrb[0].mxu1 %vm208_vm1, %v181_v36 }
  0xfe   :  { %561 = vmatprep.mubr.msk.f32.mxu1 %vm208_vm1, %v182_v37 }
 0x101   :  { %562 = vmatmul.mubr.msk.f32.gmra.mrb[2].mxu1 %vm208_vm1, %v183_v38  ;;  %v515_v38 = vld [vmem:[%s854_s7 + $0x50] sm:$0xff] }
 0x1d0   :  { %v560_v43 = vpop.f32.mrb[0].mxu1 }
 0x1d1   :  { %v293_v44 = vadd.f32 %v560_v43, %v196_v41  ;;  %v287_v45 = vpop.f32.mrb[1].mxu1 }
 0x1d2   :  { %v288_v46 = vadd.f32 %v287_v45, %v191_v42  ;;  %v517_v45 = vld [vmem:[%s854_s7 + $0x60] sm:$0xff] }
 0x1d3   :  { %v307_v47 = vmax.f32 %v293_v44, 0.0 }
 0x1d4   :  { %v306_v49 = vmax.f32 %v288_v46, 0.0  ;;  %v563_v50 = vpop.f32.mrb[2].mxu1  ;;  %v518_v46 = vld [vmem:[%s854_s7 + $0x68] sm:$0xff] }
 0x1d5   :  { %v303_v52 = vadd.f32 %v563_v50, %v206_v48  ;;  %v297_v53 = vpop.f32.mrb[3].mxu1 }
 0x1d6   :  { %v588_v54 = vpack.c.bf16 %v307_v47, %v306_v49  ;;  %v298_v55 = vadd.f32 %v297_v53, %v201_v51  ;;  %v520_v53 = vld [vmem:[%s854_s7 + $0x78] sm:$0xff] }
 0x1d7   :  { %v309_v56 = vmax.f32 %v303_v52, 0.0  ;;  %v519_v52 = vld [vmem:[%s854_s7 + $0x70] sm:$0xff] }
 0x1d8   :  { %v308_v57 = vmax.f32 %v298_v55, 0.0  ;;  %589 = vmatpush3.bf16.msra.mxu0 %v588_v54 }
 0x1d9   :  { %590 = vmatprep.subr.bf16.mxu0 %v655_v39  ;;  %v516_v39 = vld [vmem:[%s854_s7 + $0x58] sm:$0xff]  ;;  %s625_s7 = scalar_lea.vmem %s487_s15, 256 }
 0x1da   :  { %v591_v58 = vpack.c.bf16 %v309_v56, %v308_v57  ;;  %p626_p8 = scmp.ne.s32.totalorder %s487_s15, %s625_s7  ;;  %p631_p10 = scmp.lt.s32.totalorder %s625_s7, %s625_s7 }
 0x1dc   :  { %592 = vmatpush3.bf16.msra.mxu0 %v591_v58  ;;  %p632_p11 = por %p631_p10, %p630_p9 }
 0x1de   :  { %p633_p12 = pnand %p632_p11, %p626_p8 }
 0x1df   :  { %573 = vmatmul.mubr.msk.f32.vlgmr.msra.gmra.mrb[4].mxu0 %vm208_vm1, %v310_v59 }
 0x2b2   :  { %v386_v2 = vpop.f32.mrb[4].mxu0 }
 0x2b3   :  { %v387_v4 = vadd.f32 %v386_v2, %v315_v1  ;;  %v574_v5 = vpop.f32.mrb[5].mxu0 }
 0x2b5   :  { %v395_v11 = vrot.slane %v387_v4, %v394_v62  ;;  %v404_v12 = vrot.slane %v387_v4, %v403_v63  ;;  %v415_v13 = vrot.slane %v387_v4, %v414_v0  ;;  %v426_v16 = vrot.slane %v387_v4, %v425_v3 }
 0x2b6   :  { %v437_v24 = vrot.slane %v387_v4, %v436_v10  ;;  %v448_v32 = vrot.slane %v387_v4, %v447_v17  ;;  %v459_v40 = vrot.slane %v387_v4, %v458_v25  ;;  %v470_v47 = vrot.slane %v387_v4, %v469_v33 }
 0x2b7   :  { %v396_v18 = vmul.f32 %v395_v11, %v390_v6  ;;  %v397_v19 = vmul.f32 %v395_v11, %v391_v7  ;;  %v405_v20 = vmul.f32 %v507_v8, %v404_v12  ;;  %v406_v21 = vmul.f32 %v508_v9, %v404_v12 }
 0x2b8   :  { %v416_v28 = vmul.f32 %v509_v14, %v415_v13  ;;  %v417_v29 = vmul.f32 %v510_v15, %v415_v13  ;;  %v427_v36 = vmul.f32 %v511_v22, %v426_v16  ;;  %v428_v37 = vmul.f32 %v512_v23, %v426_v16 }
 0x2b9   :  { %v407_v26 = vadd.f32 %v405_v20, %v396_v18  ;;  %v408_v27 = vadd.f32 %v406_v21, %v397_v19  ;;  %v438_v43 = vmul.f32 %v513_v30, %v437_v24  ;;  %v439_v44 = vmul.f32 %v514_v31, %v437_v24 }
 0x2ba   :  { %v449_v50 = vmul.f32 %v515_v38, %v448_v32  ;;  %v450_v51 = vmul.f32 %v516_v39, %v448_v32  ;;  %v460_v56 = vmul.f32 %v517_v45, %v459_v40  ;;  %v461_v57 = vmul.f32 %v518_v46, %v459_v40 }
 0x2bb   :  { %v418_v34 = vadd.f32 %v416_v28, %v407_v26  ;;  %v419_v35 = vadd.f32 %v417_v29, %v408_v27  ;;  %v471_v60 = vmul.f32 %v519_v52, %v470_v47  ;;  %v472_v61 = vmul.f32 %v520_v53, %v470_v47 }
 0x2bc   :  { %v476_v62 = vstv %s855_s8 }
 0x2bd   :  { %v429_v41 = vadd.f32 %v427_v36, %v418_v34  ;;  %v430_v42 = vadd.f32 %v428_v37, %v419_v35 }
 0x2bf   :  { %v440_v48 = vadd.f32 %v438_v43, %v429_v41  ;;  %v441_v49 = vadd.f32 %v439_v44, %v430_v42 }
 0x2c1   :  { %v451_v54 = vadd.f32 %v449_v50, %v440_v48  ;;  %v452_v55 = vadd.f32 %v450_v51, %v441_v49 }
 0x2c3   :  { %v462_v58 = vadd.f32 %v460_v56, %v451_v54  ;;  %v463_v59 = vadd.f32 %v461_v57, %v452_v55 }
 0x2c5   :  { %v473_v63 = vadd.f32 %v471_v60, %v462_v58  ;;  %v474_v0 = vadd.f32 %v472_v61, %v463_v59 }
 0x2c7   :  { %v477_v1 = vadd.f32 %v476_v62, %v473_v63  ;;  %v478_v2 = vadd.f32 %v476_v62, %v474_v0 }
 0x2c9   :  { %479 = vst [vmem:[#allocation6] sm:$0xff] %v477_v1  ;;  %480 = vst [vmem:[#allocation6 + $0x8] sm:$0xff] %v478_v2 }
 0x2ca   :  { %636 = shalt.err (!%p633_p12)
}
 0x2cb   :  { %s637_s8 = scalar_lea.hbm %s856_s9, 256 }
 0x2cc   :  { %p638_p13 = scmp.ne.s32.totalorder %s856_s9, %s637_s8  ;;  %p641_p0 = scmp.lt.u32.totalorder %s637_s8, %s856_s9 }
 0x2ce   :  { %p643_p1 = pnand %p641_p0, %p638_p13 }
 0x2d0   :  { %646 = shalt.err (!%p643_p1)
}
 0x2d1   :  { %492 = dma.vmem_to_hbm [thread:$0]  %s487_s15, 256, %s856_s9, [#allocation5], %s652_s19, %s652_s19, %s653_s20  }
 0x2d2   :  { %649 = dma.done.wait [#allocation5], 256  }
 0x2d3   :  { %650 = vsyncadd [#allocation5], 4294967040 }
 0x2d4   :  { %496 = vsyncpa [#allocation4], 1 }
 0x2d5   :  { %497 = vsyncpa [#allocation5], 1 }

</bundles_post_ra>
